<compile_context>
chip_gen: v7x
topology: tpu7x:2x2x1
jax: 0.10.0
libtpu: 0.0.40
codegen_flags: <defaults>
</compile_context>

<pallas_src>
import jax
import jax.numpy as jnp
from jax.experimental import pallas as pl
from jax.experimental.pallas import tpu as pltpu


# ----------------------------------------------------------------------------
# Tunables
# ----------------------------------------------------------------------------
_TB_MAX = 1024                      # max batch-tile rows
_TO_MAX = 1024                      # max out_dim-tile cols (multiple of 128)
_TK_MAX = 2048                      # D <= _TK_MAX -> single-K (no reduction axis)
_VMEM_BUDGET = 28 * 1024 * 1024     # target double-buffered working set
_VMEM_LIMIT = 40 * 1024 * 1024      # < 64 MiB physical on v7x, fine on v5e/v6e


def _cdiv(a, b):
    return -(-a // b)


def _round_up(v, m):
    return ((v + m - 1) // m) * m


# ----------------------------------------------------------------------------
# Kernels
# ----------------------------------------------------------------------------
def _project_kernel_single_k(x_ref, w_ref, o_ref):
    # x_ref: (tb, D) caller dtype, w_ref: (D, to) bf16, o_ref: (tb, to).
    # Whole contraction in one MXU dot: no accumulator RMW, no k grid axis.
    a = x_ref[...].astype(w_ref.dtype)
    o_ref[...] = jnp.dot(a, w_ref[...],
                         preferred_element_type=jnp.float32).astype(o_ref.dtype)


def _project_kernel_split_k(x_ref, w_ref, o_ref, acc_ref):
    # Classic tiled matmul with f32 accumulator; K is the last grid axis.
    @pl.when(pl.program_id(2) == 0)
    def _():
        acc_ref[...] = jnp.zeros_like(acc_ref)

    a = x_ref[...].astype(w_ref.dtype)
    acc_ref[...] += jnp.dot(a, w_ref[...], preferred_element_type=jnp.float32)

    @pl.when(pl.program_id(2) == pl.num_programs(2) - 1)
    def _():
        o_ref[...] = acc_ref[...].astype(o_ref.dtype)


# ----------------------------------------------------------------------------
# Forward paths
# ----------------------------------------------------------------------------
def _forward_single_k(x, w_t, out_dtype):
    """x: (B, D) any float dtype, w_t: (D, O) bf16 (cached).  D <= _TK_MAX."""
    B, D = x.shape
    _, O = w_t.shape
    x_bytes = jnp.dtype(x.dtype).itemsize
    w_bytes = jnp.dtype(w_t.dtype).itemsize
    o_bytes = jnp.dtype(out_dtype).itemsize

    # out_dim tile (lane axis): full O if it fits, else a 128-multiple cap.
    to = O if O <= _TO_MAX else _TO_MAX

    # batch tile: as large as the VMEM budget allows (double-buffered x/w/out).
    w_tile_bytes = 2 * D * to * w_bytes
    row_bytes = 2 * (D * x_bytes + to * o_bytes)
    tb = min(_TB_MAX, max(16, (_VMEM_BUDGET - w_tile_bytes) // row_bytes))
    if tb >= B:
        tb = B                                  # full dim -> legal block shape
    else:
        tb = max(16, (tb // 16) * 16)           # bf16 packs 16 sublanes / vreg

    n_i = _cdiv(B, tb)
    n_j = _cdiv(O, to)

    # v7x: 2 TensorCores are sharded over the "parallel" axes — make sure
    # there are >= 2 parallel tiles when the problem is big enough to split.
    if n_i * n_j < 2:
        if O >= 256:
            to = _round_up(_cdiv(O, 2), 128)
            n_j = _cdiv(O, to)
        elif B >= 32:
            tb = _round_up(_cdiv(B, 2), 16)
            n_i = _cdiv(B, tb)

    # Grid ordering: the operand whose block index is constant along the
    # inner grid axis is fetched from HBM only once; the other one is
    # re-streamed per outer tile.  Hold whichever minimizes total traffic.
    x_stream = B * D * x_bytes
    w_stream = D * O * w_bytes
    traffic_x_held = x_stream + w_stream * n_i      # grid (i, j), j inner
    traffic_w_held = w_stream + x_stream * n_j      # grid (j, i), i inner
    if traffic_x_held <= traffic_w_held:
        grid = (n_i, n_j)
        x_spec = pl.BlockSpec((tb, D), lambda i, j: (i, 0))
        w_spec = pl.BlockSpec((D, to), lambda i, j: (0, j))
        o_spec = pl.BlockSpec((tb, to), lambda i, j: (i, j))
    else:
        grid = (n_j, n_i)
        x_spec = pl.BlockSpec((tb, D), lambda j, i: (i, 0))
        w_spec = pl.BlockSpec((D, to), lambda j, i: (0, j))
        o_spec = pl.BlockSpec((tb, to), lambda j, i: (i, j))

    cost = pl.CostEstimate(
        flops=2 * B * O * D,
        transcendentals=0,
        bytes_accessed=x_stream + w_stream + B * O * o_bytes)

    return pl.pallas_call(
        _project_kernel_single_k,
        out_shape=jax.ShapeDtypeStruct((B, O), out_dtype),
        grid_spec=pltpu.PrefetchScalarGridSpec(
            num_scalar_prefetch=0,
            grid=grid,
            in_specs=[x_spec, w_spec],
            out_specs=o_spec),
        compiler_params=pltpu.CompilerParams(
            dimension_semantics=("parallel", "parallel"),
            vmem_limit_bytes=_VMEM_LIMIT),
        cost_estimate=cost,
    )(x, w_t)


def _forward_split_k(x, w_t_padded, out_dim, out_dtype, compute_dtype):
    """Fallback for input_dim > _TK_MAX.  Weight is already K-padded (cached)."""
    B, D = x.shape
    Dp, _ = w_t_padded.shape
    O = out_dim
    tk = _TK_MAX

    # Only the K axis needs zero padding for correctness (garbage K elements
    # would contaminate the reduction); cast to bf16 in the same single pass.
    x_p = jnp.pad(x.astype(compute_dtype), ((0, 0), (0, Dp - D)))

    c_bytes = jnp.dtype(compute_dtype).itemsize
    o_bytes = jnp.dtype(out_dtype).itemsize

    to = O if O <= _TO_MAX else _TO_MAX
    w_tile_bytes = 2 * tk * to * c_bytes
    row_bytes = 2 * (tk * c_bytes + to * o_bytes) + to * 4   # + f32 acc row
    tb = min(_TB_MAX, max(16, (_VMEM_BUDGET - w_tile_bytes) // row_bytes))
    if tb >= B:
        tb = B
    else:
        tb = max(16, (tb // 16) * 16)

    grid = (_cdiv(B, tb), _cdiv(O, to), Dp // tk)

    cost = pl.CostEstimate(
        flops=2 * B * O * Dp,
        transcendentals=0,
        bytes_accessed=B * Dp * c_bytes + Dp * O * c_bytes + B * O * o_bytes)

    return pl.pallas_call(
        _project_kernel_split_k,
        out_shape=jax.ShapeDtypeStruct((B, O), out_dtype),
        grid_spec=pltpu.PrefetchScalarGridSpec(
            num_scalar_prefetch=0,
            grid=grid,
            in_specs=[pl.BlockSpec((tb, tk), lambda i, j, k: (i, k)),
                      pl.BlockSpec((tk, to), lambda i, j, k: (k, j))],
            out_specs=pl.BlockSpec((tb, to), lambda i, j, k: (i, j)),
            scratch_shapes=[pltpu.VMEM((tb, to), jnp.float32)]),
        compiler_params=pltpu.CompilerParams(
            dimension_semantics=("parallel", "parallel", "arbitrary"),
            vmem_limit_bytes=_VMEM_LIMIT),
        cost_estimate=cost,
    )(x_p, w_t_padded)


# ----------------------------------------------------------------------------
# Module
# ----------------------------------------------------------------------------
class TorchRandomProject:
    """JAX/Pallas port of the PyTorch TorchRandomProject module.

    The random projection matrix (the torch buffer) is created at construction
    and the kernel-ready weight — transposed to (input_dim, out_dim), cast to
    bf16, and K-padded if the split-K path is needed — is prepared ONCE here,
    so the per-call path reads it from HBM exactly once.
    """

    def __init__(self, input_dim, out_dim, *, key, weight_dtype=jnp.bfloat16):
        self.input_dim = int(input_dim)
        self.out_dim = int(out_dim)
        self.weight_dtype = weight_dtype
        # Mirrors torch.randn(1, out_dim, input_dim) buffer (different RNG).
        self.matrix = jax.random.normal(
            key, (1, out_dim, input_dim), dtype=jnp.float32)

        # ---- one-time weight preparation (hoisted out of the call path) ----
        w_t = jnp.transpose(self.matrix[0], (1, 0)).astype(weight_dtype)  # (D,O)
        if self.input_dim > _TK_MAX:
            dp = _round_up(self.input_dim, _TK_MAX)
            w_t = jnp.pad(w_t, ((0, dp - self.input_dim), (0, 0)))
        self._w_prepared = jax.block_until_ready(w_t)
        # TODO(synk): optional int8 (v6e) / fp8 (v7x) cached-weight path with a
        # per-row scale folded into the writeback would halve the weight stream.

    def __call__(self, x):
        assert x.ndim == 2 and x.shape[1] == self.input_dim, \
            f"expected (B, {self.input_dim}), got {x.shape}"
        out_dtype = x.dtype
        if self.input_dim <= _TK_MAX:
            return _forward_single_k(x, self._w_prepared, out_dtype)
        return _forward_split_k(x, self._w_prepared, self.out_dim, out_dtype,
                                self.weight_dtype)


if __name__ == "__main__":
    key = jax.random.PRNGKey(0)
    k_mat, k_x = jax.random.split(key)

    batch = 2
    input_dim = 32
    out_dim = 16

    proj = TorchRandomProject(input_dim, out_dim, key=k_mat)
    x = jax.random.normal(k_x, (batch, input_dim), dtype=jnp.float32)

    out = jax.block_until_ready(proj(x))

    # Reference: exact broadcast-multiply-sum semantics (f32).
    ref = jnp.sum(proj.matrix * x[:, None, :], axis=-1)
    assert out.shape == (batch, out_dim)
    # bf16 operands + f32 accumulation => small drift vs the f32 reference.
    assert jnp.allclose(out, ref, atol=2e-1, rtol=5e-2), \
        f"max abs err {float(jnp.max(jnp.abs(out - ref)))}"

    print("KERNEL_OK")
</pallas_src>

<mosaic_0001>
module attributes {stable_mosaic.version = 11 : i64} {
  func.func @_project_kernel_single_k(%arg0: i32, %arg1: i32, %arg2: memref<2x32xf32, #tpu.memory_space<vmem>>, %arg3: memref<32x16xbf16, #tpu.memory_space<vmem>>, %arg4: memref<2x16xf32, #tpu.memory_space<vmem>>) attributes {dimension_semantics = [#tpu.dimension_semantics<parallel>, #tpu.dimension_semantics<parallel>], iteration_bounds = array<i64: 1, 1>, scalar_prefetch = 0 : i64, scratch_operands = 0 : i64, tpu.core_type = #tpu.core_type<tc>, window_params = [{transform_indices = @transform_0, window_bounds = array<i64: 2, 32>}, {transform_indices = @transform_1, window_bounds = array<i64: 32, 16>}, {transform_indices = @transform_2, window_bounds = array<i64: 2, 16>}]} {
    %c0 = arith.constant 0 : index
    %c0_0 = arith.constant 0 : index
    %0 = vector.load %arg2[%c0, %c0_0] : memref<2x32xf32, #tpu.memory_space<vmem>>, vector<2x32xf32>
    %1 = arith.truncf %0 : vector<2x32xf32> to vector<2x32xbf16>
    %c0_1 = arith.constant 0 : index
    %c0_2 = arith.constant 0 : index
    %2 = vector.load %arg3[%c0_1, %c0_2] : memref<32x16xbf16, #tpu.memory_space<vmem>>, vector<32x16xbf16>
    %cst = arith.constant dense<0.000000e+00> : vector<2x16xf32>
    %3 = tpu.matmul %1, %2, %cst {dimension_numbers = #tpu.dot_dimension_numbers<[1], [0], [0], [1], [0, 0, 1, 1], [], []>} : vector<2x32xbf16>, vector<32x16xbf16>, vector<2x16xf32> -> vector<2x16xf32>
    %c0_3 = arith.constant 0 : index
    %c0_4 = arith.constant 0 : index
    %4 = vector.load %arg4[%c0_3, %c0_4] : memref<2x16xf32, #tpu.memory_space<vmem>>, vector<2x16xf32>
    tpu.vector_store %arg4[%c0_3, %c0_4], %3 {strides = array<i32>} : memref<2x16xf32, #tpu.memory_space<vmem>>, vector<2x16xf32>,
    return
  }
  func.func @transform_0(%arg0: i32, %arg1: i32) -> (i32, i32) {
    %c0_i32 = arith.constant 0 : i32
    %c0_i32_0 = arith.constant 0 : i32
    return %arg0, %c0_i32 : i32, i32
  }
  func.func @transform_1(%arg0: i32, %arg1: i32) -> (i32, i32) {
    %c0_i32 = arith.constant 0 : i32
    %c0_i32_0 = arith.constant 0 : i32
    return %c0_i32, %arg1 : i32, i32
  }
  func.func @transform_2(%arg0: i32, %arg1: i32) -> (i32, i32) {
    %c0_i32 = arith.constant 0 : i32
    return %arg0, %arg1 : i32, i32
  }
}

</mosaic_0001>

<bundles_post_ra>
// kernel: tpu_custom_call.1
= control target key start
LH: loop header
LB: loop body
LE: loop exit
PB: predicated region body
PF: predicated region fallthrough
CT: control target
= control target key end

     0   :  { %v134_v1 = vmov 0.0   ;;  %vm135_vm0 = vmmov 0   ;;  %s173_s0 = inlined_call_operand.vmem [shape: f32[2,32], index: 0, kind: input, shape index: {}]   ;;  %s174_s1 = inlined_call_operand.vmem [shape: bf16[32,16], index: 1, kind: input, shape index: {}]   ;;  %s175_s2 = inlined_call_operand.hbm [shape: f32[2,16], index: 2, kind: output, shape index: {}]  }
   0x1   :  { %v108_v0 = vld [vmem:[%s174_s1] sm:$0xff]   ;;  %97 = vmatprep.subr.bf16.mxu0 %v134_v1  ;;  %v109_v2 = vld [vmem:[%s174_s1 + $0x8] sm:$0xff]   ;;  %101 = vmatprep.mubr.msk.bf16.mxu0 %vm135_vm0, %v134_v1 }
   0x2   :  { %98 = vmatpush3.bf16.msra.mxu0 %v108_v0  ;;  %v13_v3 = vld [vmem:[%s173_s0] sm:$0x3] }
   0x3   :  { %7 = vsyncpa [#allocation3], 0  ;;  %99 = vmatprep.subr.bf16.mxu0 %v134_v1  ;;  %v14_v4 = vpack.c.bf16 %v13_v3, %v13_v3  ;;  %vm31_vm1 = vcmask 261120   ;;  %s136_s15 = smov [#allocation2]   ;;  %vm75_vm2 = vcmask 123904  }
   0x4   :  { %s83_s16 = sshll.u32 %s136_s15, 4  ;;  %s84_s16 = int_to_ptr.vmem [resolvable:$true] %s83_s16 }
   0x5   :  { %s110_s1 = scalar_lea.vmem %s84_s16, 32  ;;  %p115_p1 = scmp.lt.s32.totalorder %s84_s16, %s84_s16 }
   0x6   :  { %100 = vmatpush3.bf16.msra.mxu0 %v109_v2  ;;  %p111_p0 = scmp.ne.s32.totalorder %s84_s16, %s110_s1  ;;  %p116_p2 = scmp.lt.s32.totalorder %s110_s1, %s110_s1 }
   0x8   :  { %p117_p3 = por %p116_p2, %p115_p1 }
   0x9   :  { %102 = vmatmul.mubr.msk.bf16.vlgmr.msra.gmra.mrb[0].mxu0 %vm31_vm1, %v14_v4 }
   0xa   :  { %p118_p4 = pnand %p117_p3, %p111_p0 }
  0xdc   :  { %v69_v5 = vpop.f32.mrb[0].mxu0 }
  0xdd   :  { %76 = vst.msk [vmem:[#allocation2] sm:$0x3] %vm75_vm2, %v69_v5  ;;  %v103_v6 = vpop.f32.mrb[1].mxu0 }
  0xde   :  { %v72_v7 = vpop.f32.mrb[2].mxu0 }
  0xdf   :  { %121 = shalt.err (!%p118_p4)
}
  0xe0   :  { %s122_s18 = scalar_lea.hbm %s175_s2, 32 }
  0xe1   :  { %p123_p5 = scmp.ne.s32.totalorder %s175_s2, %s122_s18  ;;  %p126_p6 = scmp.lt.u32.totalorder %s122_s18, %s175_s2 }
  0xe3   :  { %p128_p7 = pnand %p126_p6, %p123_p5 }
  0xe5   :  { %131 = shalt.err (!%p128_p7)
}
  0xe6   :  { %86 = dma.vmem_to_hbm [thread:$0]  %s84_s16, 32, %s175_s2, [#allocation3]   ;;  %v104_v8 = vpop.f32.mrb[3].mxu0 }
  0xe7   :  { %132 = dma.done.wait [#allocation3], 32  }
  0xe8   :  { %133 = vsyncadd [#allocation3], 4294967264 }
  0xe9   :  { %90 = vsyncpa [#allocation3], 1 }

</bundles_post_ra>
